<compile_context>
chip_gen: v6e
topology: v6e:2x2x1
jax: 0.10.0
libtpu: 0.0.40
codegen_flags: <defaults>
</compile_context>

<pallas_src>
import jax
import jax.numpy as jnp
import numpy as np
from jax.experimental import pallas as pl
from jax.experimental.pallas import tpu as pltpu


# ----------------------------------------------------------------------------
# Kernel: one (batch-block, time-chunk) grid step.
# ----------------------------------------------------------------------------
def rnn_encoder_kernel(maxlen_ref,                       # SMEM (1,) i32  (scalar prefetch)
                       x_ref,                            # (Tc, Bb, D)   f32
                       len_ref,                          # (Bb, 1)       i32
                       w_ih_ref,                         # (D, 4*Hp)     bf16
                       w_hh_ref,                         # (Hp, 4*Hp)    bf16
                       b_ref,                            # (1, 4*Hp)     f32
                       w1_ref,                           # (Hp, OutP)    bf16
                       b1_ref,                           # (1, OutP)     f32
                       out_ref,                          # (Bb, OutP)    f32
                       h_sc, c_sc):                      # VMEM (Bb, Hp) f32 scratch
    Tc, Bb, D = x_ref.shape
    Hp = w_hh_ref.shape[0]
    t_chunk = pl.program_id(1)

    @pl.when(t_chunk == 0)
    def _init():
        h_sc[...] = jnp.zeros_like(h_sc)
        c_sc[...] = jnp.zeros_like(c_sc)

    # Skip chunks that lie entirely past every sequence's length.
    @pl.when(t_chunk * Tc < maxlen_ref[0])
    def _chunk():
        # Hoisted input projection for the whole chunk: Tc*Bb rows to the MXU.
        x2d = x_ref[...].reshape(Tc * Bb, D).astype(jnp.bfloat16)
        pregates = jnp.dot(x2d, w_ih_ref[...],
                           preferred_element_type=jnp.float32) + b_ref[...]
        w_hh = w_hh_ref[...]
        lengths = len_ref[...]                  # (Bb, 1) int32
        t0 = t_chunk * Tc

        h = h_sc[...]
        c = c_sc[...]
        for t in range(Tc):                     # fully unrolled, static slices
            gates = pregates[t * Bb:(t + 1) * Bb, :] + jnp.dot(
                h.astype(jnp.bfloat16), w_hh, preferred_element_type=jnp.float32)
            # gate columns are 128-lane aligned (Hp = round_up(H, 128)).
            i_g = jax.nn.sigmoid(gates[:, 0 * Hp:1 * Hp])
            f_g = jax.nn.sigmoid(gates[:, 1 * Hp:2 * Hp])
            g_g = jnp.tanh(gates[:, 2 * Hp:3 * Hp])
            o_g = jax.nn.sigmoid(gates[:, 3 * Hp:4 * Hp])
            c_new = f_g * c + i_g * g_g
            h_new = o_g * jnp.tanh(c_new)
            # packed-sequence semantics: state advances only while t < length,
            # so h_sc ends up holding the hidden state at step length-1.
            mask = (t0 + t) < lengths           # (Bb, 1) bool, broadcasts over Hp
            h = jnp.where(mask, h_new, h)
            c = jnp.where(mask, c_new, c)
        h_sc[...] = h
        c_sc[...] = c

    @pl.when(t_chunk == pl.num_programs(1) - 1)
    def _finalize():
        # dropout(p=0.2) is the identity in eval mode.
        y = jnp.dot(h_sc[...].astype(jnp.bfloat16), w1_ref[...],
                    preferred_element_type=jnp.float32) + b1_ref[...]
        out_ref[...] = y.astype(out_ref.dtype)


# ----------------------------------------------------------------------------
# Wrapper
# ----------------------------------------------------------------------------
def _round_up(v, m):
    return (v + m - 1) // m * m


def rnn_encoder_forward(x_tbd, lengths, params, *, time_chunk=8):
    """x_tbd: (T, B, in_size) f32 time-major; lengths: (B,) int.
    Returns (B, out_size) f32."""
    T, B, D = x_tbd.shape
    H = params["w_hh"].shape[1]          # w_hh stored as (4H, H)
    out_size = params["w1"].shape[0]     # w1 stored as (out, H)

    Hp = _round_up(H, 128)               # lane-align each gate block
    OutP = _round_up(out_size, 128)      # lane-dense output
    Bb = 8                               # sublane-aligned batch block
    Bp = _round_up(B, Bb)
    Tc = max(1, min(time_chunk, T))
    Tp = _round_up(T, Tc)

    f32, bf16 = jnp.float32, jnp.bfloat16

    # ---- pad activations / lengths ----------------------------------------
    x_p = jnp.zeros((Tp, Bp, D), f32).at[:T, :B, :].set(x_tbd.astype(f32))
    len_p = jnp.zeros((Bp, 1), jnp.int32).at[:B, 0].set(lengths.astype(jnp.int32))
    maxlen = jnp.max(len_p).reshape(1).astype(jnp.int32)

    # ---- pad / cast weights (gate order [i, f, g, o], padding cols zero) ---
    def pad_gate_cols(w_t):              # (rows, 4H) -> (rows, 4*Hp)
        rows = w_t.shape[0]
        w4 = w_t.reshape(rows, 4, H)
        return (jnp.zeros((rows, 4, Hp), w_t.dtype).at[:, :, :H].set(w4)
                .reshape(rows, 4 * Hp))

    w_ih_p = pad_gate_cols(params["w_ih"].T).astype(bf16)                    # (D, 4Hp)
    w_hh_p = jnp.zeros((Hp, 4 * Hp), bf16).at[:H, :].set(
        pad_gate_cols(params["w_hh"].T).astype(bf16))                        # (Hp, 4Hp)
    b_p = pad_gate_cols(
        (params["b_ih"] + params["b_hh"]).reshape(1, 4 * H)).astype(f32)     # (1, 4Hp)
    w1_p = jnp.zeros((Hp, OutP), bf16).at[:H, :out_size].set(
        params["w1"].T.astype(bf16))                                         # (Hp, OutP)
    b1_p = jnp.zeros((1, OutP), f32).at[0, :out_size].set(
        params["b1"].astype(f32))                                            # (1, OutP)

    n_b, n_t = Bp // Bb, Tp // Tc

    grid_spec = pltpu.PrefetchScalarGridSpec(
        num_scalar_prefetch=1,
        grid=(n_b, n_t),
        in_specs=[
            pl.BlockSpec((Tc, Bb, D), lambda b, t, ml: (t, b, 0)),     # x chunk
            pl.BlockSpec((Bb, 1), lambda b, t, ml: (b, 0)),            # lengths
            pl.BlockSpec((D, 4 * Hp), lambda b, t, ml: (0, 0)),        # W_ih^T
            pl.BlockSpec((Hp, 4 * Hp), lambda b, t, ml: (0, 0)),       # W_hh^T
            pl.BlockSpec((1, 4 * Hp), lambda b, t, ml: (0, 0)),        # bias
            pl.BlockSpec((Hp, OutP), lambda b, t, ml: (0, 0)),         # W1^T
            pl.BlockSpec((1, OutP), lambda b, t, ml: (0, 0)),          # b1
        ],
        out_specs=pl.BlockSpec((Bb, OutP), lambda b, t, ml: (b, 0)),
        scratch_shapes=[pltpu.VMEM((Bb, Hp), f32),                     # h carry
                        pltpu.VMEM((Bb, Hp), f32)],                    # c carry
    )

    y_p = pl.pallas_call(
        rnn_encoder_kernel,
        out_shape=jax.ShapeDtypeStruct((Bp, OutP), f32),
        grid_spec=grid_spec,
        compiler_params=pltpu.CompilerParams(
            dimension_semantics=("parallel", "arbitrary"),
            vmem_limit_bytes=64 * 1024 * 1024),
    )(maxlen, x_p, len_p, w_ih_p, w_hh_p, b_p, w1_p, b1_p)

    return y_p[:B, :out_size]


# ----------------------------------------------------------------------------
# Pure-JAX reference mirroring the kernel's bf16-matmul / f32-state math.
# ----------------------------------------------------------------------------
def rnn_encoder_reference(x_tbd, lengths, params):
    T, B, D = x_tbd.shape
    H = params["w_hh"].shape[1]
    bf16 = jnp.bfloat16
    w_ih_t = params["w_ih"].T.astype(bf16)
    w_hh_t = params["w_hh"].T.astype(bf16)
    b = (params["b_ih"] + params["b_hh"]).reshape(1, 4 * H)
    h = jnp.zeros((B, H), jnp.float32)
    c = jnp.zeros((B, H), jnp.float32)
    for t in range(T):
        gates = (jnp.dot(x_tbd[t].astype(bf16), w_ih_t, preferred_element_type=jnp.float32)
                 + jnp.dot(h.astype(bf16), w_hh_t, preferred_element_type=jnp.float32) + b)
        i = jax.nn.sigmoid(gates[:, 0 * H:1 * H])
        f = jax.nn.sigmoid(gates[:, 1 * H:2 * H])
        g = jnp.tanh(gates[:, 2 * H:3 * H])
        o = jax.nn.sigmoid(gates[:, 3 * H:4 * H])
        c_new = f * c + i * g
        h_new = o * jnp.tanh(c_new)
        mask = (t < lengths)[:, None]
        h = jnp.where(mask, h_new, h)
        c = jnp.where(mask, c_new, c)
    return (jnp.dot(h.astype(bf16), params["w1"].T.astype(bf16),
                    preferred_element_type=jnp.float32)
            + params["b1"].reshape(1, -1))


if __name__ == "__main__":
    T, B = 8, 2           # seq_len, batch
    in_size = 16
    hidden_size = 32
    out_size = 24

    key = jax.random.PRNGKey(0)
    k = jax.random.split(key, 8)

    s = 1.0 / np.sqrt(hidden_size)
    params = {
        "w_ih": jax.random.uniform(k[0], (4 * hidden_size, in_size), jnp.float32, -s, s),
        "w_hh": jax.random.uniform(k[1], (4 * hidden_size, hidden_size), jnp.float32, -s, s),
        "b_ih": jax.random.uniform(k[2], (4 * hidden_size,), jnp.float32, -s, s),
        "b_hh": jax.random.uniform(k[3], (4 * hidden_size,), jnp.float32, -s, s),
        "w1":   jax.random.uniform(k[4], (out_size, hidden_size), jnp.float32, -s, s),
        "b1":   jax.random.uniform(k[5], (out_size,), jnp.float32, -s, s),
    }

    x = jax.random.normal(k[6], (T, B, in_size), jnp.float32)   # time-major
    lengths = jnp.array([8, 5], dtype=jnp.int32)                # variable lengths <= T

    y = rnn_encoder_forward(x, lengths, params, time_chunk=4)   # 2 time chunks
    y = jax.block_until_ready(y)

    y_ref = rnn_encoder_reference(x, lengths, params)
    np.testing.assert_allclose(np.asarray(y), np.asarray(y_ref), rtol=1e-2, atol=1e-2)

    print("KERNEL_OK")
</pallas_src>

<mosaic_0001>
module attributes {stable_mosaic.version = 11 : i64} {
  func.func @rnn_encoder_kernel(%arg0: i32, %arg1: i32, %arg2: memref<1xi32, #tpu.memory_space<smem>>, %arg3: memref<4x8x16xf32, #tpu.memory_space<vmem>>, %arg4: memref<8x1xi32, #tpu.memory_space<vmem>>, %arg5: memref<16x512xbf16, #tpu.memory_space<vmem>>, %arg6: memref<128x512xbf16, #tpu.memory_space<vmem>>, %arg7: memref<1x512xf32, #tpu.memory_space<vmem>>, %arg8: memref<128x128xbf16, #tpu.memory_space<vmem>>, %arg9: memref<1x128xf32, #tpu.memory_space<vmem>>, %arg10: memref<8x128xf32, #tpu.memory_space<vmem>>, %arg11: memref<8x128xf32, #tpu.memory_space<vmem>>, %arg12: memref<8x128xf32, #tpu.memory_space<vmem>>) attributes {dimension_semantics = [#tpu.dimension_semantics<parallel>, #tpu.dimension_semantics<arbitrary>], iteration_bounds = array<i64: 1, 2>, scalar_prefetch = 1 : i64, scratch_operands = 2 : i64, tpu.core_type = #tpu.core_type<tc>, window_params = [{transform_indices = @transform_0, window_bounds = array<i64: 4, 8, 16>}, {transform_indices = @transform_1, window_bounds = array<i64: 8, 1>}, {pipeline_mode = #tpu.pipeline_mode<synchronous>, transform_indices = @transform_2, window_bounds = array<i64: 16, 512>}, {pipeline_mode = #tpu.pipeline_mode<synchronous>, transform_indices = @transform_3, window_bounds = array<i64: 128, 512>}, {pipeline_mode = #tpu.pipeline_mode<synchronous>, transform_indices = @transform_4, window_bounds = array<i64: 1, 512>}, {pipeline_mode = #tpu.pipeline_mode<synchronous>, transform_indices = @transform_5, window_bounds = array<i64: 128, 128>}, {pipeline_mode = #tpu.pipeline_mode<synchronous>, transform_indices = @transform_6, window_bounds = array<i64: 1, 128>}, {transform_indices = @transform_7, window_bounds = array<i64: 8, 128>}]} {
    %c0_i32 = arith.constant 0 : i32
    %0 = arith.cmpi eq, %arg1, %c0_i32 : i32
    %1 = arith.extui %0 : i1 to i32
    %c0_i32_0 = arith.constant 0 : i32
    %2 = arith.cmpi ne, %1, %c0_i32_0 : i32
    scf.if %2 {
      %cst = arith.constant 0.000000e+00 : f32
      %11 = vector.broadcast %cst : f32 to vector<8x128xf32>
      %c0_3 = arith.constant 0 : index
      %c0_4 = arith.constant 0 : index
      %12 = vector.load %arg11[%c0_3, %c0_4] : memref<8x128xf32, #tpu.memory_space<vmem>>, vector<8x128xf32>
      tpu.vector_store %arg11[%c0_3, %c0_4], %11 {strides = array<i32>} : memref<8x128xf32, #tpu.memory_space<vmem>>, vector<8x128xf32>,
      %cst_5 = arith.constant 0.000000e+00 : f32
      %13 = vector.broadcast %cst_5 : f32 to vector<8x128xf32>
      %c0_6 = arith.constant 0 : index
      %c0_7 = arith.constant 0 : index
      %14 = vector.load %arg12[%c0_6, %c0_7] : memref<8x128xf32, #tpu.memory_space<vmem>>, vector<8x128xf32>
      tpu.vector_store %arg12[%c0_6, %c0_7], %13 {strides = array<i32>} : memref<8x128xf32, #tpu.memory_space<vmem>>, vector<8x128xf32>,
    } else {
    }
    %c4_i32 = arith.constant 4 : i32
    %3 = arith.muli %arg1, %c4_i32 : i32
    %c0 = arith.constant 0 : index
    %4 = memref.load %arg2[%c0] : memref<1xi32, #tpu.memory_space<smem>>
    %5 = arith.cmpi slt, %3, %4 : i32
    %6 = arith.extui %5 : i1 to i32
    %c0_i32_1 = arith.constant 0 : i32
    %7 = arith.cmpi ne, %6, %c0_i32_1 : i32
    scf.if %7 {
      %c0_3 = arith.constant 0 : index
      %c0_4 = arith.constant 0 : index
      %c0_5 = arith.constant 0 : index
      %11 = vector.load %arg3[%c0_3, %c0_4, %c0_5] : memref<4x8x16xf32, #tpu.memory_space<vmem>>, vector<4x8x16xf32>
      %12 = vector.shape_cast %11 : vector<4x8x16xf32> to vector<32x16xf32>
      %13 = arith.truncf %12 : vector<32x16xf32> to vector<32x16xbf16>
      %c0_6 = arith.constant 0 : index
      %c0_7 = arith.constant 0 : index
      %14 = vector.load %arg5[%c0_6, %c0_7] : memref<16x512xbf16, #tpu.memory_space<vmem>>, vector<16x512xbf16>
      %cst = arith.constant dense<0.000000e+00> : vector<32x512xf32>
      %15 = tpu.matmul %13, %14, %cst {dimension_numbers = #tpu.dot_dimension_numbers<[1], [0], [0], [1], [0, 0, 1, 1], [], []>} : vector<32x16xbf16>, vector<16x512xbf16>, vector<32x512xf32> -> vector<32x512xf32>
      %c0_8 = arith.constant 0 : index
      %c0_9 = arith.constant 0 : index
      %16 = vector.load %arg7[%c0_8, %c0_9] : memref<1x512xf32, #tpu.memory_space<vmem>>, vector<1x512xf32>
      %17 = vector.broadcast %16 : vector<1x512xf32> to vector<32x512xf32>
      %18 = arith.addf %15, %17 : vector<32x512xf32>
      %c0_10 = arith.constant 0 : index
      %c0_11 = arith.constant 0 : index
      %19 = vector.load %arg6[%c0_10, %c0_11] : memref<128x512xbf16, #tpu.memory_space<vmem>>, vector<128x512xbf16>
      %c0_12 = arith.constant 0 : index
      %c0_13 = arith.constant 0 : index
      %20 = vector.load %arg4[%c0_12, %c0_13] : memref<8x1xi32, #tpu.memory_space<vmem>>, vector<8x1xi32>
      %c4_i32_14 = arith.constant 4 : i32
      %21 = arith.muli %arg1, %c4_i32_14 : i32
      %c0_15 = arith.constant 0 : index
      %c0_16 = arith.constant 0 : index
      %22 = vector.load %arg11[%c0_15, %c0_16] : memref<8x128xf32, #tpu.memory_space<vmem>>, vector<8x128xf32>
      %c0_17 = arith.constant 0 : index
      %c0_18 = arith.constant 0 : index
      %23 = vector.load %arg12[%c0_17, %c0_18] : memref<8x128xf32, #tpu.memory_space<vmem>>, vector<8x128xf32>
      %24 = vector.extract_strided_slice %18 {offsets = [0, 0], sizes = [8, 512], strides = [1, 1]} : vector<32x512xf32> to vector<8x512xf32>
      %25 = arith.truncf %22 : vector<8x128xf32> to vector<8x128xbf16>
      %cst_19 = arith.constant dense<0.000000e+00> : vector<8x512xf32>
      %26 = tpu.matmul %25, %19, %cst_19 {dimension_numbers = #tpu.dot_dimension_numbers<[1], [0], [0], [1], [0, 0, 1, 1], [], []>} : vector<8x128xbf16>, vector<128x512xbf16>, vector<8x512xf32> -> vector<8x512xf32>
      %27 = arith.addf %24, %26 : vector<8x512xf32>
      %28 = vector.extract_strided_slice %27 {offsets = [0, 0], sizes = [8, 128], strides = [1, 1]} : vector<8x512xf32> to vector<8x128xf32>
      %29 = arith.negf %28 : vector<8x128xf32>
      %30 = math.exp %29 : vector<8x128xf32>
      %cst_20 = arith.constant 1.000000e+00 : f32
      %31 = vector.broadcast %cst_20 : f32 to vector<8x128xf32>
      %32 = arith.addf %31, %30 : vector<8x128xf32>
      %33 = arith.divf %31, %32 : vector<8x128xf32>
      %34 = vector.extract_strided_slice %27 {offsets = [0, 128], sizes = [8, 128], strides = [1, 1]} : vector<8x512xf32> to vector<8x128xf32>
      %35 = arith.negf %34 : vector<8x128xf32>
      %36 = math.exp %35 : vector<8x128xf32>
      %cst_21 = arith.constant 1.000000e+00 : f32
      %37 = vector.broadcast %cst_21 : f32 to vector<8x128xf32>
      %38 = arith.addf %37, %36 : vector<8x128xf32>
      %39 = arith.divf %37, %38 : vector<8x128xf32>
      %40 = vector.extract_strided_slice %27 {offsets = [0, 256], sizes = [8, 128], strides = [1, 1]} : vector<8x512xf32> to vector<8x128xf32>
      %41 = math.tanh %40 : vector<8x128xf32>
      %42 = vector.extract_strided_slice %27 {offsets = [0, 384], sizes = [8, 128], strides = [1, 1]} : vector<8x512xf32> to vector<8x128xf32>
      %43 = arith.negf %42 : vector<8x128xf32>
      %44 = math.exp %43 : vector<8x128xf32>
      %cst_22 = arith.constant 1.000000e+00 : f32
      %45 = vector.broadcast %cst_22 : f32 to vector<8x128xf32>
      %46 = arith.addf %45, %44 : vector<8x128xf32>
      %47 = arith.divf %45, %46 : vector<8x128xf32>
      %48 = arith.mulf %39, %23 : vector<8x128xf32>
      %49 = arith.mulf %33, %41 : vector<8x128xf32>
      %50 = arith.addf %48, %49 : vector<8x128xf32>
      %51 = math.tanh %50 : vector<8x128xf32>
      %52 = arith.mulf %47, %51 : vector<8x128xf32>
      %c0_i32_23 = arith.constant 0 : i32
      %53 = arith.addi %21, %c0_i32_23 : i32
      %54 = vector.broadcast %53 : i32 to vector<8x1xi32>
      %55 = arith.cmpi slt, %54, %20 : vector<8x1xi32>
      %56 = vector.shape_cast %55 : vector<8x1xi1> to vector<8x1xi1>
      %57 = vector.broadcast %56 : vector<8x1xi1> to vector<8x128xi1>
      %58 = arith.select %57, %52, %22 : vector<8x128xi1>, vector<8x128xf32>
      %59 = vector.shape_cast %55 : vector<8x1xi1> to vector<8x1xi1>
      %60 = vector.broadcast %59 : vector<8x1xi1> to vector<8x128xi1>
      %61 = arith.select %60, %50, %23 : vector<8x128xi1>, vector<8x128xf32>
      %62 = vector.extract_strided_slice %18 {offsets = [8, 0], sizes = [8, 512], strides = [1, 1]} : vector<32x512xf32> to vector<8x512xf32>
      %63 = arith.truncf %58 : vector<8x128xf32> to vector<8x128xbf16>
      %cst_24 = arith.constant dense<0.000000e+00> : vector<8x512xf32>
      %64 = tpu.matmul %63, %19, %cst_24 {dimension_numbers = #tpu.dot_dimension_numbers<[1], [0], [0], [1], [0, 0, 1, 1], [], []>} : vector<8x128xbf16>, vector<128x512xbf16>, vector<8x512xf32> -> vector<8x512xf32>
      %65 = arith.addf %62, %64 : vector<8x512xf32>
      %66 = vector.extract_strided_slice %65 {offsets = [0, 0], sizes = [8, 128], strides = [1, 1]} : vector<8x512xf32> to vector<8x128xf32>
      %67 = arith.negf %66 : vector<8x128xf32>
      %68 = math.exp %67 : vector<8x128xf32>
      %cst_25 = arith.constant 1.000000e+00 : f32
      %69 = vector.broadcast %cst_25 : f32 to vector<8x128xf32>
      %70 = arith.addf %69, %68 : vector<8x128xf32>
      %71 = arith.divf %69, %70 : vector<8x128xf32>
      %72 = vector.extract_strided_slice %65 {offsets = [0, 128], sizes = [8, 128], strides = [1, 1]} : vector<8x512xf32> to vector<8x128xf32>
      %73 = arith.negf %72 : vector<8x128xf32>
      %74 = math.exp %73 : vector<8x128xf32>
      %cst_26 = arith.constant 1.000000e+00 : f32
      %75 = vector.broadcast %cst_26 : f32 to vector<8x128xf32>
      %76 = arith.addf %75, %74 : vector<8x128xf32>
      %77 = arith.divf %75, %76 : vector<8x128xf32>
      %78 = vector.extract_strided_slice %65 {offsets = [0, 256], sizes = [8, 128], strides = [1, 1]} : vector<8x512xf32> to vector<8x128xf32>
      %79 = math.tanh %78 : vector<8x128xf32>
      %80 = vector.extract_strided_slice %65 {offsets = [0, 384], sizes = [8, 128], strides = [1, 1]} : vector<8x512xf32> to vector<8x128xf32>
      %81 = arith.negf %80 : vector<8x128xf32>
      %82 = math.exp %81 : vector<8x128xf32>
      %cst_27 = arith.constant 1.000000e+00 : f32
      %83 = vector.broadcast %cst_27 : f32 to vector<8x128xf32>
      %84 = arith.addf %83, %82 : vector<8x128xf32>
      %85 = arith.divf %83, %84 : vector<8x128xf32>
      %86 = arith.mulf %77, %61 : vector<8x128xf32>
      %87 = arith.mulf %71, %79 : vector<8x128xf32>
      %88 = arith.addf %86, %87 : vector<8x128xf32>
      %89 = math.tanh %88 : vector<8x128xf32>
      %90 = arith.mulf %85, %89 : vector<8x128xf32>
      %c1_i32_28 = arith.constant 1 : i32
      %91 = arith.addi %21, %c1_i32_28 : i32
      %92 = vector.broadcast %91 : i32 to vector<8x1xi32>
      %93 = arith.cmpi slt, %92, %20 : vector<8x1xi32>
      %94 = vector.shape_cast %93 : vector<8x1xi1> to vector<8x1xi1>
      %95 = vector.broadcast %94 : vector<8x1xi1> to vector<8x128xi1>
      %96 = arith.select %95, %90, %58 : vector<8x128xi1>, vector<8x128xf32>
      %97 = vector.shape_cast %93 : vector<8x1xi1> to vector<8x1xi1>
      %98 = vector.broadcast %97 : vector<8x1xi1> to vector<8x128xi1>
      %99 = arith.select %98, %88, %61 : vector<8x128xi1>, vector<8x128xf32>
      %100 = vector.extract_strided_slice %18 {offsets = [16, 0], sizes = [8, 512], strides = [1, 1]} : vector<32x512xf32> to vector<8x512xf32>
      %101 = arith.truncf %96 : vector<8x128xf32> to vector<8x128xbf16>
      %cst_29 = arith.constant dense<0.000000e+00> : vector<8x512xf32>
      %102 = tpu.matmul %101, %19, %cst_29 {dimension_numbers = #tpu.dot_dimension_numbers<[1], [0], [0], [1], [0, 0, 1, 1], [], []>} : vector<8x128xbf16>, vector<128x512xbf16>, vector<8x512xf32> -> vector<8x512xf32>
      %103 = arith.addf %100, %102 : vector<8x512xf32>
      %104 = vector.extract_strided_slice %103 {offsets = [0, 0], sizes = [8, 128], strides = [1, 1]} : vector<8x512xf32> to vector<8x128xf32>
      %105 = arith.negf %104 : vector<8x128xf32>
      %106 = math.exp %105 : vector<8x128xf32>
      %cst_30 = arith.constant 1.000000e+00 : f32
      %107 = vector.broadcast %cst_30 : f32 to vector<8x128xf32>
      %108 = arith.addf %107, %106 : vector<8x128xf32>
      %109 = arith.divf %107, %108 : vector<8x128xf32>
      %110 = vector.extract_strided_slice %103 {offsets = [0, 128], sizes = [8, 128], strides = [1, 1]} : vector<8x512xf32> to vector<8x128xf32>
      %111 = arith.negf %110 : vector<8x128xf32>
      %112 = math.exp %111 : vector<8x128xf32>
      %cst_31 = arith.constant 1.000000e+00 : f32
      %113 = vector.broadcast %cst_31 : f32 to vector<8x128xf32>
      %114 = arith.addf %113, %112 : vector<8x128xf32>
      %115 = arith.divf %113, %114 : vector<8x128xf32>
      %116 = vector.extract_strided_slice %103 {offsets = [0, 256], sizes = [8, 128], strides = [1, 1]} : vector<8x512xf32> to vector<8x128xf32>
      %117 = math.tanh %116 : vector<8x128xf32>
      %118 = vector.extract_strided_slice %103 {offsets = [0, 384], sizes = [8, 128], strides = [1, 1]} : vector<8x512xf32> to vector<8x128xf32>
      %119 = arith.negf %118 : vector<8x128xf32>
      %120 = math.exp %119 : vector<8x128xf32>
      %cst_32 = arith.constant 1.000000e+00 : f32
      %121 = vector.broadcast %cst_32 : f32 to vector<8x128xf32>
      %122 = arith.addf %121, %120 : vector<8x128xf32>
      %123 = arith.divf %121, %122 : vector<8x128xf32>
      %124 = arith.mulf %115, %99 : vector<8x128xf32>
      %125 = arith.mulf %109, %117 : vector<8x128xf32>
      %126 = arith.addf %124, %125 : vector<8x128xf32>
      %127 = math.tanh %126 : vector<8x128xf32>
      %128 = arith.mulf %123, %127 : vector<8x128xf32>
      %c2_i32 = arith.constant 2 : i32
      %129 = arith.addi %21, %c2_i32 : i32
      %130 = vector.broadcast %129 : i32 to vector<8x1xi32>
      %131 = arith.cmpi slt, %130, %20 : vector<8x1xi32>
      %132 = vector.shape_cast %131 : vector<8x1xi1> to vector<8x1xi1>
      %133 = vector.broadcast %132 : vector<8x1xi1> to vector<8x128xi1>
      %134 = arith.select %133, %128, %96 : vector<8x128xi1>, vector<8x128xf32>
      %135 = vector.shape_cast %131 : vector<8x1xi1> to vector<8x1xi1>
      %136 = vector.broadcast %135 : vector<8x1xi1> to vector<8x128xi1>
      %137 = arith.select %136, %126, %99 : vector<8x128xi1>, vector<8x128xf32>
      %138 = vector.extract_strided_slice %18 {offsets = [24, 0], sizes = [8, 512], strides = [1, 1]} : vector<32x512xf32> to vector<8x512xf32>
      %139 = arith.truncf %134 : vector<8x128xf32> to vector<8x128xbf16>
      %cst_33 = arith.constant dense<0.000000e+00> : vector<8x512xf32>
      %140 = tpu.matmul %139, %19, %cst_33 {dimension_numbers = #tpu.dot_dimension_numbers<[1], [0], [0], [1], [0, 0, 1, 1], [], []>} : vector<8x128xbf16>, vector<128x512xbf16>, vector<8x512xf32> -> vector<8x512xf32>
      %141 = arith.addf %138, %140 : vector<8x512xf32>
      %142 = vector.extract_strided_slice %141 {offsets = [0, 0], sizes = [8, 128], strides = [1, 1]} : vector<8x512xf32> to vector<8x128xf32>
      %143 = arith.negf %142 : vector<8x128xf32>
      %144 = math.exp %143 : vector<8x128xf32>
      %cst_34 = arith.constant 1.000000e+00 : f32
      %145 = vector.broadcast %cst_34 : f32 to vector<8x128xf32>
      %146 = arith.addf %145, %144 : vector<8x128xf32>
      %147 = arith.divf %145, %146 : vector<8x128xf32>
      %148 = vector.extract_strided_slice %141 {offsets = [0, 128], sizes = [8, 128], strides = [1, 1]} : vector<8x512xf32> to vector<8x128xf32>
      %149 = arith.negf %148 : vector<8x128xf32>
      %150 = math.exp %149 : vector<8x128xf32>
      %cst_35 = arith.constant 1.000000e+00 : f32
      %151 = vector.broadcast %cst_35 : f32 to vector<8x128xf32>
      %152 = arith.addf %151, %150 : vector<8x128xf32>
      %153 = arith.divf %151, %152 : vector<8x128xf32>
      %154 = vector.extract_strided_slice %141 {offsets = [0, 256], sizes = [8, 128], strides = [1, 1]} : vector<8x512xf32> to vector<8x128xf32>
      %155 = math.tanh %154 : vector<8x128xf32>
      %156 = vector.extract_strided_slice %141 {offsets = [0, 384], sizes = [8, 128], strides = [1, 1]} : vector<8x512xf32> to vector<8x128xf32>
      %157 = arith.negf %156 : vector<8x128xf32>
      %158 = math.exp %157 : vector<8x128xf32>
      %cst_36 = arith.constant 1.000000e+00 : f32
      %159 = vector.broadcast %cst_36 : f32 to vector<8x128xf32>
      %160 = arith.addf %159, %158 : vector<8x128xf32>
      %161 = arith.divf %159, %160 : vector<8x128xf32>
      %162 = arith.mulf %153, %137 : vector<8x128xf32>
      %163 = arith.mulf %147, %155 : vector<8x128xf32>
      %164 = arith.addf %162, %163 : vector<8x128xf32>
      %165 = math.tanh %164 : vector<8x128xf32>
      %166 = arith.mulf %161, %165 : vector<8x128xf32>
      %c3_i32 = arith.constant 3 : i32
      %167 = arith.addi %21, %c3_i32 : i32
      %168 = vector.broadcast %167 : i32 to vector<8x1xi32>
      %169 = arith.cmpi slt, %168, %20 : vector<8x1xi32>
      %170 = vector.shape_cast %169 : vector<8x1xi1> to vector<8x1xi1>
      %171 = vector.broadcast %170 : vector<8x1xi1> to vector<8x128xi1>
      %172 = arith.select %171, %166, %134 : vector<8x128xi1>, vector<8x128xf32>
      %173 = vector.shape_cast %169 : vector<8x1xi1> to vector<8x1xi1>
      %174 = vector.broadcast %173 : vector<8x1xi1> to vector<8x128xi1>
      %175 = arith.select %174, %164, %137 : vector<8x128xi1>, vector<8x128xf32>
      %c0_37 = arith.constant 0 : index
      %c0_38 = arith.constant 0 : index
      %176 = vector.load %arg11[%c0_37, %c0_38] : memref<8x128xf32, #tpu.memory_space<vmem>>, vector<8x128xf32>
      tpu.vector_store %arg11[%c0_37, %c0_38], %172 {strides = array<i32>} : memref<8x128xf32, #tpu.memory_space<vmem>>, vector<8x128xf32>,
      %c0_39 = arith.constant 0 : index
      %c0_40 = arith.constant 0 : index
      %177 = vector.load %arg12[%c0_39, %c0_40] : memref<8x128xf32, #tpu.memory_space<vmem>>, vector<8x128xf32>
      tpu.vector_store %arg12[%c0_39, %c0_40], %175 {strides = array<i32>} : memref<8x128xf32, #tpu.memory_space<vmem>>, vector<8x128xf32>,
    } else {
    }
    %c1_i32 = arith.constant 1 : i32
    %8 = arith.cmpi eq, %arg1, %c1_i32 : i32
    %9 = arith.extui %8 : i1 to i32
    %c0_i32_2 = arith.constant 0 : i32
    %10 = arith.cmpi ne, %9, %c0_i32_2 : i32
    scf.if %10 {
      %c0_3 = arith.constant 0 : index
      %c0_4 = arith.constant 0 : index
      %11 = vector.load %arg11[%c0_3, %c0_4] : memref<8x128xf32, #tpu.memory_space<vmem>>, vector<8x128xf32>
      %12 = arith.truncf %11 : vector<8x128xf32> to vector<8x128xbf16>
      %c0_5 = arith.constant 0 : index
      %c0_6 = arith.constant 0 : index
      %13 = vector.load %arg8[%c0_5, %c0_6] : memref<128x128xbf16, #tpu.memory_space<vmem>>, vector<128x128xbf16>
      %cst = arith.constant dense<0.000000e+00> : vector<8x128xf32>
      %14 = tpu.matmul %12, %13, %cst {dimension_numbers = #tpu.dot_dimension_numbers<[1], [0], [0], [1], [0, 0, 1, 1], [], []>} : vector<8x128xbf16>, vector<128x128xbf16>, vector<8x128xf32> -> vector<8x128xf32>
      %c0_7 = arith.constant 0 : index
      %c0_8 = arith.constant 0 : index
      %15 = vector.load %arg9[%c0_7, %c0_8] : memref<1x128xf32, #tpu.memory_space<vmem>>, vector<1x128xf32>
      %16 = vector.broadcast %15 : vector<1x128xf32> to vector<8x128xf32>
      %17 = arith.addf %14, %16 : vector<8x128xf32>
      %c0_9 = arith.constant 0 : index
      %c0_10 = arith.constant 0 : index
      %18 = vector.load %arg10[%c0_9, %c0_10] : memref<8x128xf32, #tpu.memory_space<vmem>>, vector<8x128xf32>
      tpu.vector_store %arg10[%c0_9, %c0_10], %17 {strides = array<i32>} : memref<8x128xf32, #tpu.memory_space<vmem>>, vector<8x128xf32>,
    } else {
    }
    return
  }
  func.func @transform_0(%arg0: i32, %arg1: i32, %arg2: memref<1xi32, #tpu.memory_space<smem>>) -> (i32, i32, i32) {
    %c0_i32 = arith.constant 0 : i32
    %c0_i32_0 = arith.constant 0 : i32
    return %arg1, %arg0, %c0_i32 : i32, i32, i32
  }
  func.func @transform_1(%arg0: i32, %arg1: i32, %arg2: memref<1xi32, #tpu.memory_space<smem>>) -> (i32, i32) {
    %c0_i32 = arith.constant 0 : i32
    %c0_i32_0 = arith.constant 0 : i32
    return %arg0, %c0_i32 : i32, i32
  }
  func.func @transform_2(%arg0: i32, %arg1: i32, %arg2: memref<1xi32, #tpu.memory_space<smem>>) -> (i32, i32) {
    %c0_i32 = arith.constant 0 : i32
    %c0_i32_0 = arith.constant 0 : i32
    %c0_i32_1 = arith.constant 0 : i32
    return %c0_i32, %c0_i32_0 : i32, i32
  }
  func.func @transform_3(%arg0: i32, %arg1: i32, %arg2: memref<1xi32, #tpu.memory_space<smem>>) -> (i32, i32) {
    %c0_i32 = arith.constant 0 : i32
    %c0_i32_0 = arith.constant 0 : i32
    %c0_i32_1 = arith.constant 0 : i32
    return %c0_i32, %c0_i32_0 : i32, i32
  }
  func.func @transform_4(%arg0: i32, %arg1: i32, %arg2: memref<1xi32, #tpu.memory_space<smem>>) -> (i32, i32) {
    %c0_i32 = arith.constant 0 : i32
    %c0_i32_0 = arith.constant 0 : i32
    %c0_i32_1 = arith.constant 0 : i32
    return %c0_i32, %c0_i32_0 : i32, i32
  }
  func.func @transform_5(%arg0: i32, %arg1: i32, %arg2: memref<1xi32, #tpu.memory_space<smem>>) -> (i32, i32) {
    %c0_i32 = arith.constant 0 : i32
    %c0_i32_0 = arith.constant 0 : i32
    %c0_i32_1 = arith.constant 0 : i32
    return %c0_i32, %c0_i32_0 : i32, i32
  }
  func.func @transform_6(%arg0: i32, %arg1: i32, %arg2: memref<1xi32, #tpu.memory_space<smem>>) -> (i32, i32) {
    %c0_i32 = arith.constant 0 : i32
    %c0_i32_0 = arith.constant 0 : i32
    %c0_i32_1 = arith.constant 0 : i32
    return %c0_i32, %c0_i32_0 : i32, i32
  }
  func.func @transform_7(%arg0: i32, %arg1: i32, %arg2: memref<1xi32, #tpu.memory_space<smem>>) -> (i32, i32) {
    %c0_i32 = arith.constant 0 : i32
    %c0_i32_0 = arith.constant 0 : i32
    return %arg0, %c0_i32 : i32, i32
  }
}

</mosaic_0001>

<bundles_post_ra>
// kernel: tpu_custom_call.1
= control target key start
LH: loop header
LB: loop body
LE: loop exit
PB: predicated region body
PF: predicated region fallthrough
CT: control target
= control target key end

     0   :  { %s2527_s0 = inlined_call_operand.<no memory space> [shape: s32[1], index: 0, kind: input, shape index: {}]   ;;  %s2528_s1 = inlined_call_operand.hbm [shape: f32[8,8,16], index: 1, kind: input, shape index: {}]   ;;  %s2529_s2 = inlined_call_operand.vmem [shape: s32[8,1], index: 2, kind: input, shape index: {}]   ;;  %s2530_s3 = inlined_call_operand.hbm [shape: bf16[16,512], index: 3, kind: input, shape index: {}]   ;;  %s2531_s4 = inlined_call_operand.hbm [shape: bf16[128,512], index: 4, kind: input, shape index: {}]   ;;  %s2532_s5 = inlined_call_operand.vmem [shape: f32[1,512], index: 5, kind: input, shape index: {}]   ;;  %s2533_s6 = inlined_call_operand.hbm [shape: bf16[128,128], index: 6, kind: input, shape index: {}]   ;;  %s2534_s7 = inlined_call_operand.vmem [shape: f32[1,128], index: 7, kind: input, shape index: {}]   ;;  %s2535_s8 = inlined_call_operand.hbm [shape: f32[8,128], index: 8, kind: output, shape index: {}]  }
   0x1   :  { %13 = sst [smem:[#allocation5]] %s2527_s0 }
   0x2   :  { %14 = vsyncpa [#allocation7], 0 }
   0x3   :  { %16 = vsyncpa [#allocation7 + $0x1], 0 }
   0x4   :  { %17 = vsyncpa [#allocation10], 0 }
   0x5   :  { %18 = vsyncpa [#allocation13], 0 }
   0x6   :  { %19 = vsyncpa [#allocation8], 0  ;;  %s2063_s29 = smov 0   ;;  %s2065_s30 = smov 0  }
   0x7   :  { %s2067_s9 = smov 0   ;;  %s2069_s10 = smov 0  }
   0x8   :  { %s2071_s11 = smov 0   ;;  %s2073_s12 = smov 0  }
   0x9 LB: > { %s2539_s0 = sadd.s32 4294967295, %s1998_s12   ;;  %p59_p0 = scmp.ne.s32.totalorder %s1982_s30, %s1978_s29  ;;  %s1998_s12 = sphi %s2073_s12, %s25_s12   ;;  %s1994_s11 = sphi %s2071_s11, %s2572_s11   ;;  %s1990_s10 = sphi %s2069_s10, %s2571_s10   ;;  %s1986_s9 = sphi %s2067_s9, %s2570_s9   ;;  %s1982_s30 = sphi %s2065_s30, %s2569_s30   ;;  %s1978_s29 = sphi %s2063_s29, %s2568_s29  }
   0xa   : > { %p2095_p1 = scmp.eq.s32.totalorder %s2539_s0, 0  ;;  %p1462_p2 = scmp.ge.s32.totalorder %s1998_s12, 1 }
   0xb   : > { %p227_p3 = scmp.lt.s32.totalorder %s1998_s12, 3  ;;  %s2000_s16 = smov [#allocation9]  }
   0xc   : > { %s2542_s13 = scalar_select %p2095_p1, 1, 0 }
   0xd   : > { %p2103_p4 = por %p2095_p1, %p59_p0  ;;  %p2107_p5 = pnand %p1462_p2, %p227_p3 }
   0xe   : > { %s246_s17 = sshll.u32 %s2000_s16, 4  ;;  %s2001_s19 = smov [#allocation11]   ;;  %s247_s17 = int_to_ptr.vmem [resolvable:$true] %s246_s17 }
   0xf   : > { %s2543_s14 = scalar_select %p2103_p4, 1, 0 }
  0x10   : > { %p1593_p6 = pneg %p2107_p5  ;;  %s259_s20 = sshll.u32 %s2001_s19, 4  ;;  %s260_s20 = int_to_ptr.vmem [resolvable:$true] %s259_s20 }
  0x11   : > { %s2002_s21 = smov [#allocation12]   ;;  %s1817_s23 = scalar_lea.vmem %s247_s17, 512 }
  0x12   : > { %p2115_p7 = pnand %p1593_p6, %p2095_p1  ;;  %s275_s22 = sshll.u32 %s2002_s21, 4  ;;  %s276_s22 = int_to_ptr.vmem [resolvable:$true] %s275_s22 }
  0x13   : > { %p1818_p9 = scmp.ne.s32.totalorder %s247_s17, %s1817_s23  ;;  %p1825_p12 = scmp.lt.s32.totalorder %s247_s17, %s247_s17 }
  0x14   : > { %p1808_p8 = pneg %p2115_p7  ;;  %p1826_p13 = scmp.lt.s32.totalorder %s1817_s23, %s1817_s23 }
  0x16   : > { %p1820_p10 = pnand %p1818_p9, %p1808_p8  ;;  %p1827_p0 = por %p1826_p13, %p1825_p12 }
  0x18   : > { %p1821_p11 = pneg %p1820_p10 }
  0x1a   : > { %p1828_p2 = pnand %p1827_p0, %p1821_p11 }
  0x1c   : > { %1831 = shalt.err (!%p1828_p2)
}
  0x1d   : > { %s2003_s24 = smov 256   ;;  %s2004_s25 = smov 16  }
  0x1e   : > { %1596 = dma.hbm_to_vmem [thread:$0]  (!%p2115_p7), %s2530_s3, 512, %s247_s17, [#allocation10], %s2003_s24, %s2003_s24, %s2004_s25  }
  0x1f   : > { %s1843_s28 = scalar_lea.vmem %s260_s20, 4096  ;;  %p1851_p10 = scmp.lt.s32.totalorder %s260_s20, %s260_s20 }
  0x20   : > { %p1844_p3 = scmp.ne.s32.totalorder %s260_s20, %s1843_s28  ;;  %p1852_p1 = scmp.lt.s32.totalorder %s1843_s28, %s1843_s28 }
  0x22   : > { %p1846_p6 = pnand %p1844_p3, %p1808_p8  ;;  %p1853_p12 = por %p1852_p1, %p1851_p10 }
  0x24   : > { %p1847_p9 = pneg %p1846_p6 }
  0x26   : > { %p1854_p11 = pnand %p1853_p12, %p1847_p9 }
  0x28   : > { %1857 = shalt.err (!%p1854_p11)
}
  0x29   : > { %1599 = dma.hbm_to_vmem [thread:$0]  (!%p2115_p7), %s2531_s4, 4096, %s260_s20, [#allocation10], %s2003_s24, %s2003_s24, %s2004_s25  }
  0x2a   : > { %s1869_s17 = scalar_lea.vmem %s276_s22, 1024  ;;  %p1877_p3 = scmp.lt.s32.totalorder %s276_s22, %s276_s22 }
  0x2b   : > { %p1870_p13 = scmp.ne.s32.totalorder %s276_s22, %s1869_s17  ;;  %p1878_p6 = scmp.lt.s32.totalorder %s1869_s17, %s1869_s17 }
  0x2d   : > { %p1872_p0 = pnand %p1870_p13, %p1808_p8  ;;  %p1879_p4 = por %p1878_p6, %p1877_p3 }
  0x2f   : > { %p1873_p2 = pneg %p1872_p0 }
  0x31   : > { %p1880_p1 = pnand %p1879_p4, %p1873_p2 }
  0x33   : > { %1883 = shalt.err (!%p1880_p1)
}
  0x34   : > { %s2005_s19 = smov 64   ;;  %s2006_s20 = smov 4  }
  0x35   : > { %1602 = dma.hbm_to_vmem [thread:$0]  (!%p2115_p7), %s2533_s6, 1024, %s276_s22, [#allocation13], %s2005_s19, %s2005_s19, %s2006_s20  }
  0x36   : > { %s46_s24 = sadd.s32 1, %s1986_s9  ;;  %s34_s25 = sadd.s32 1, %s1994_s11 }
  0x37   : > { %p53_p4 = scmp.ne.s32.totalorder %s1986_s9, %s1982_s30  ;;  %p35_p8 = scmp.ge.s32.totalorder %s34_s25, 2 }
  0x38   : > { %p54_p9 = scmp.eq.s32.totalorder %s1998_s12, 0  ;;  %p1610_p10 = scmp.lt.s32.totalorder %s1998_s12, 2 }
  0x39   : > { %s292_s26 = sand.u32 1, %s1986_s9   ;;  %s2574_s25 = smov (%p35_p8, %s34_s25), 0 }
  0x3a   : > { %p55_p12 = por %p54_p9, %p53_p4  ;;  %s41_s27 = ssub.s32 %s1994_s11, %s2574_s25 }
  0x3b   : > { %s1468_s28 = sshll.u32 %s292_s26, 5  ;;  %p44_p11 = scmp.eq.s32.totalorder %s41_s27, 0 }
  0x3c   : > { %s1545_s18 = sshll.u32 %s1994_s11, 9  ;;  %s296_s29 = scalar_lea.vmem [#allocation6], %s1468_s28 }
  0x3d   : > { %s304_s16 = sshll.u32 %s296_s29, 4  ;;  %s303_s20 = scalar_lea.hbm %s2528_s1, %s1545_s18  ;;  %s305_s16 = int_to_ptr.vmem [resolvable:$true] %s304_s16 }
  0x3e   : > { %s2158_s22 = scalar_select %p44_p11, %s1986_s9, %s46_s24  }
  0x3f   : > { %p2165_p7 = pnand %p1610_p10, %p55_p12  ;;  %s293_s23 = scalar_lea.sflag [#allocation7], %s292_s26 }
  0x40   : > { %s1897_s27 = scalar_lea.vmem %s305_s16, 512  ;;  %s2007_s24 = smov [#allocation6]  }
  0x41   : > { %p1886_p13 = pneg %p2165_p7  ;;  %p1898_p0 = scmp.ne.s32.totalorder %s305_s16, %s1897_s27 }
  0x42   : > { %s1902_s28 = sshll.u32 %s2007_s24, 4  ;;  %s1903_s28 = int_to_ptr.vmem [resolvable:$false] %s1902_s28 }
  0x43   : > { %p1900_p2 = pnand %p1898_p0, %p1886_p13  ;;  %s1904_s29 = scalar_lea.vmem %s1903_s28, 1024 }
  0x44   : > { %p1905_p6 = scmp.lt.s32.totalorder %s305_s16, %s1903_s28  ;;  %p1906_p1 = scmp.lt.s32.totalorder %s1904_s29, %s1897_s27 }
  0x45   : > { %p1901_p3 = pneg %p1900_p2 }
  0x46   : > { %p1907_p4 = por %p1906_p1, %p1905_p6 }
  0x48   : > { %p1908_p8 = pnand %p1907_p4, %p1901_p3 }
  0x4a   : > { %1911 = shalt.err (!%p1908_p8)
}
  0x4b   : > { %s2008_s18 = smov 128   ;;  %s2009_s17 = smov 8  }
  0x4c   : > { %1606 = dma.hbm_to_vmem [thread:$0]  (!%p2165_p7), %s303_s20, 512, %s305_s16, %s293_s23, %s2008_s18, %s2008_s18, %s2009_s17  }
  0x4d   : > { %316 = sbr.rel (%p2107_p5) target bundleno = 1410 (0x582), region = 48  ;;  %s318_s26 = sand.u32 (!%p2107_p5), 1, %s1982_s30  }
  0x4e   : > { %s1472_s19 = sshll.u32 (!%p2107_p5), %s318_s26, 5  ;;  %s319_s24 = scalar_lea.sflag (!%p2107_p5), [#allocation7], %s318_s26 }
  0x4f   : > { %s2176_s0 = scalar_lea.vmem (!%p2107_p5), [#allocation6], %s1472_s19  ;;  %p2547_p9 = scmp.ne.s32.totalorder (!%p2107_p5), %s2543_s14, 0 }
  0x52   : > { %1961 = dma.done.wait (%p2547_p9), %s319_s24, 512  }
  0x53   : > { %1963 = vsyncadd (%p2547_p9), %s319_s24, 4294966784  ;;  %p2548_p10 = scmp.ne.s32.totalorder %s2542_s13, 0 }
  0x55   : > { %1965 = dma.done.wait (%p2548_p10), [#allocation10], 4608  }
  0x56   : > { %1967 = vsyncadd (%p2548_p10), [#allocation10], 4294962688 }
  0x57   : > { %1969 = dma.done.wait (%p2548_p10), [#allocation13], 1024  }
  0x58   : > { %1971 = vsyncadd (%p2548_p10), [#allocation13], 4294966272  ;;  %p1476_p5 = scmp.ne.s32.totalorder %s1990_s10, 0 }
  0x5a   : > { %373 = sbr.rel (%p1476_p5) target bundleno = 97 (0x61), region = 68 }
  0x5f   : > { %v2010_v0 = vmov 0.0  }
  0x60   : > { %374 = vst [vmem:[#allocation2] sm:$0xff] %v2010_v0  ;;  %375 = vst [vmem:[#allocation3] sm:$0xff] %v2010_v0 }
  0x61 PF: > { %s2192_s14 = sshll.u32 %s1990_s10, 2  ;;  %s377_s15 = sld [smem:[#allocation5]] }
  0x67   : > { %p1478_p12 = scmp.ge.s32.totalorder %s2192_s14, %s377_s15 }
  0x69   : > { %381 = sbr.rel (%p1478_p12) target bundleno = 1156 (0x484), region = 72 }
  0x6e   : > { %v1680_v1 = vld [vmem:[#allocation9 + $0x4] ss:$16 sps:$4 sm:$0xff]   ;;  %v1682_v2 = vld [vmem:[#allocation9 + $0xc] ss:$16 sps:$4 sm:$0xff]   ;;  %v2540_v3 = vmov 0   ;;  %vm434_vm0 = vcmask 130048   ;;  %v853_v34 = vstv %s2192_s14  ;;  %v394_v51 = vlaneseq }
  0x6f   : > { %473 = vmatprep.mubr.bf16.mxu0 %v2540_v3  ;;  %526 = vmatprep.mubr.bf16.mxu1 %v2540_v3  ;;  %v1684_v4 = vld [vmem:[#allocation9] ss:$16 sps:$4 sm:$0xff]   ;;  %v1685_v5 = vld [vmem:[#allocation9 + $0x8] ss:$16 sps:$4 sm:$0xff]   ;;  %v2201_v9 = vld [vmem:[#allocation11 + $0xe4] ss:$16 sps:$4 sm:$0xff]  }
  0x70   : > { %455 = vmatprep.subr.bf16.mxu0 %v1680_v1  ;;  %v382_v6 = vld [vmem:[%s2176_s0] sm:$0xff]  ;;  %1678 = vset.pattern.permute.xlu0 %v2540_v3  ;;  %v383_v7 = vld [vmem:[%s2176_s0 + $0x8] sm:$0xff]  ;;  %v384_v26 = vld [vmem:[%s2176_s0 + $0x10] sm:$0xff]  ;;  %s973_s13 = sadd.s32 1, %s2192_s14  ;;  %v395_v52 = vshrl.u32 %v394_v51, 7  ;;  %s1094_s23 = sadd.s32 2, %s2192_s14 }
  0x71   : > { %508 = vmatprep.subr.bf16.mxu1 %v1682_v2  ;;  %1679 = vset.pattern.permute.xlu1 %v2540_v3  ;;  %v386_v8 = vpack.c.bf16 %v383_v7, %v382_v6  ;;  %v2203_v10 = vld [vmem:[#allocation11 + $0xec] ss:$16 sps:$4 sm:$0xff]   ;;  %v2205_v11 = vld [vmem:[#allocation11 + $0xe0] ss:$16 sps:$4 sm:$0xff]   ;;  %v2207_v12 = vld [vmem:[#allocation11 + $0xe8] ss:$16 sps:$4 sm:$0xff]   ;;  %v974_v35 = vstv %s973_s13 }
  0x72   : > { %456 = vmatpush1.bf16.msra.mxu0 %v1684_v4  ;;  %509 = vmatpush1.bf16.msra.mxu1 %v1685_v5  ;;  %v2210_v13 = vld [vmem:[#allocation11 + $0xc4] ss:$16 sps:$4 sm:$0xff]   ;;  %v2214_v14 = vld [vmem:[#allocation11 + $0xcc] ss:$16 sps:$4 sm:$0xff]   ;;  %v2218_v15 = vld [vmem:[#allocation11 + $0xc0] ss:$16 sps:$4 sm:$0xff]  }
  0x73   : > { %743 = vmatprep.subr.bf16.mxu0 %v2201_v9  ;;  %784 = vmatprep.subr.bf16.mxu1 %v2203_v10  ;;  %v2220_v16 = vld [vmem:[#allocation11 + $0xc8] ss:$16 sps:$4 sm:$0xff]   ;;  %v2224_v17 = vld [vmem:[#allocation11 + $0xa4] ss:$16 sps:$4 sm:$0xff]   ;;  %v2227_v18 = vld [vmem:[#allocation11 + $0xac] ss:$16 sps:$4 sm:$0xff]  }
  0x74   : > { %v2232_v19 = vld [vmem:[#allocation11 + $0xa0] ss:$16 sps:$4 sm:$0xff]   ;;  %v2236_v20 = vld [vmem:[#allocation11 + $0xa8] ss:$16 sps:$4 sm:$0xff]   ;;  %v2238_v21 = vld [vmem:[#allocation11 + $0x84] ss:$16 sps:$4 sm:$0xff]  }
  0x75   : > { %1483 = vmatmul.mubr.msk.bf16.vlgmr.msra.gmra.mxu0 %vm434_vm0, %v386_v8  ;;  %1485 = vmatmul.mubr.msk.bf16.vlgmr.msra.gmra.mxu1 %vm434_vm0, %v386_v8  ;;  %v2241_v22 = vld [vmem:[#allocation11 + $0x8c] ss:$16 sps:$4 sm:$0xff]   ;;  %v2243_v23 = vld [vmem:[#allocation11 + $0x80] ss:$16 sps:$4 sm:$0xff]   ;;  %v2246_v24 = vld [vmem:[#allocation11 + $0x88] ss:$16 sps:$4 sm:$0xff]  }
  0x76   : > { %744 = vmatpush1.bf16.msra.mxu0 %v2205_v11  ;;  %785 = vmatpush1.bf16.msra.mxu1 %v2207_v12  ;;  %v2248_v25 = vld [vmem:[#allocation11 + $0x64] ss:$16 sps:$4 sm:$0xff]   ;;  %v385_v27 = vld [vmem:[%s2176_s0 + $0x18] sm:$0xff]  ;;  %v2257_v30 = vld [vmem:[#allocation11 + $0x60] ss:$16 sps:$4 sm:$0xff]   ;;  %v404_v53 = vsub.s32 2, %v395_v52 }
  0x77   : > { %745 = vmatprep.subr.bf16.mxu0 %v2210_v13  ;;  %786 = vmatprep.subr.bf16.mxu1 %v2214_v14  ;;  %v2255_v28 = vld [vmem:[#allocation11 + $0x6c] ss:$16 sps:$4 sm:$0xff]   ;;  %v387_v29 = vpack.c.bf16 %v385_v27, %v384_v26  ;;  %v2260_v31 = vld [vmem:[#allocation11 + $0x68] ss:$16 sps:$4 sm:$0xff]   ;;  %v2266_v32 = vld [vmem:[#allocation11 + $0x44] ss:$16 sps:$4 sm:$0xff]  }
  0x78   : > { %483 = vmatprep.mubr.bf16.mxu0 %v2540_v3  ;;  %536 = vmatprep.mubr.bf16.mxu1 %v2540_v3  ;;  %v2270_v33 = vld [vmem:[#allocation11 + $0x4c] ss:$16 sps:$4 sm:$0xff]   ;;  %v2276_v36 = vld [vmem:[#allocation11 + $0x40] ss:$16 sps:$4 sm:$0xff]   ;;  %v2280_v37 = vld [vmem:[#allocation11 + $0x48] ss:$16 sps:$4 sm:$0xff]  }
  0x79   : > { %v2282_v38 = vld [vmem:[#allocation11 + $0x24] ss:$16 sps:$4 sm:$0xff]   ;;  %v2290_v40 = vld [vmem:[#allocation11 + $0x2c] ss:$16 sps:$4 sm:$0xff]   ;;  %v2296_v42 = vld [vmem:[#allocation11 + $0x20] ss:$16 sps:$4 sm:$0xff]  }
  0x7a   : > { %746 = vmatpush1.bf16.msra.mxu0 %v2218_v15  ;;  %787 = vmatpush1.bf16.msra.mxu1 %v2220_v16  ;;  %v2287_v39 = vld [vmem:[%s2529_s2] sm:$0xff]  ;;  %v2300_v43 = vld [vmem:[#allocation11 + $0x28] ss:$16 sps:$4 sm:$0xff]   ;;  %v2306_v46 = vld [vmem:[#allocation11 + $0xc] ss:$16 sps:$4 sm:$0xff]   ;;  %v396_v54 = vsub.s32 0, %v395_v52 }
  0x7b   : > { %747 = vmatprep.subr.bf16.mxu0 %v2224_v17  ;;  %788 = vmatprep.subr.bf16.mxu1 %v2227_v18  ;;  %vm854_vm1 = vcmp.lt.s32.totalorder %v853_v34, %v2287_v39  ;;  %vm975_vm2 = vcmp.lt.s32.totalorder %v974_v35, %v2287_v39  ;;  %v2302_v44 = vld [vmem:[#allocation11 + $0x4] ss:$16 sps:$4 sm:$0xff]   ;;  %v2309_v47 = vld [vmem:[#allocation11] ss:$16 sps:$4 sm:$0xff]   ;;  %v2315_v49 = vld [vmem:[#allocation11 + $0x8] ss:$16 sps:$4 sm:$0xff]  }
  0x7c   : > { %v855_v41 = vsel %vm854_vm1, 1, %v2540_v3  ;;  %v976_v45 = vsel %vm975_vm2, 1, %v2540_v3  ;;  %v2311_v48 = vld [vmem:[#allocation2] sm:$0xff]  ;;  %v408_v57 = vsub.s32 3, %v395_v52  ;;  %v400_v58 = vsub.s32 1, %v395_v52  ;;  %s1215_s27 = sadd.s32 3, %s2192_s14 }
  0x7d   : > { %1486 = vmatmul.mubr.msk.bf16.gmra.mxu1 %vm434_vm0, %v387_v29  ;;  %1484 = vmatmul.mubr.msk.bf16.gmra.mxu0 %vm434_vm0, %v387_v29  ;;  %v582_v50 = vpack.c.bf16 %v2311_v48, %v2311_v48  ;;  %v392_v55 = vld [vmem:[%s2532_s5] sm:$0xf] }
  0x7e   : > { %748 = vmatpush1.bf16.msra.mxu0 %v2232_v19  ;;  %789 = vmatpush1.bf16.msra.mxu1 %v2236_v20  ;;  %v405_v61 = vrot.slane %v392_v55, %v404_v53  ;;  %v397_v62 = vrot.slane %v392_v55, %v396_v54  ;;  %v409_v1 = vrot.slane %v392_v55, %v408_v57 }
  0x7f   : > { %749 = vmatprep.subr.bf16.mxu0 %v2238_v21  ;;  %790 = vmatprep.subr.bf16.mxu1 %v2241_v22  ;;  %v401_v2 = vrot.slane %v392_v55, %v400_v58 }
  0x80   : > { %775 = vmatprep.mubr.bf16.mxu0 %v2540_v3  ;;  %816 = vmatprep.mubr.bf16.mxu1 %v2540_v3 }
  0x81   : > { %857 = vperm.xlu0 %1678, %v855_v41  }
  0x82   : > { %750 = vmatpush1.bf16.msra.mxu0 %v2243_v23  ;;  %791 = vmatpush1.bf16.msra.mxu1 %v2246_v24 }
  0x83   : > { %751 = vmatprep.subr.bf16.mxu0 %v2248_v25  ;;  %792 = vmatprep.subr.bf16.mxu1 %v2255_v28 }
  0x85   : > { %978 = vperm.xlu0 %1678, %v976_v45  }
  0x86   : > { %752 = vmatpush1.bf16.msra.mxu0 %v2257_v30  ;;  %793 = vmatpush1.bf16.msra.mxu1 %v2260_v31 }
  0x87   : > { %753 = vmatprep.subr.bf16.mxu0 %v2266_v32  ;;  %794 = vmatprep.subr.bf16.mxu1 %v2270_v33 }
  0x8a   : > { %754 = vmatpush1.bf16.msra.mxu0 %v2276_v36  ;;  %795 = vmatpush1.bf16.msra.mxu1 %v2280_v37 }
  0x8b   : > { %755 = vmatprep.subr.bf16.mxu0 %v2282_v38  ;;  %796 = vmatprep.subr.bf16.mxu1 %v2290_v40 }
  0x8e   : > { %756 = vmatpush1.bf16.msra.mxu0 %v2296_v42  ;;  %797 = vmatpush1.bf16.msra.mxu1 %v2300_v43 }
  0x8f   : > { %757 = vmatprep.subr.bf16.mxu0 %v2302_v44  ;;  %798 = vmatprep.subr.bf16.mxu1 %v2306_v46 }
  0x92   : > { %758 = vmatpush1.bf16.msra.mxu0 %v2309_v47  ;;  %799 = vmatpush1.bf16.msra.mxu1 %v2315_v49 }
  0x93   : > { %863 = vmatprep.subr.bf16.mxu0 %v2201_v9  ;;  %904 = vmatprep.subr.bf16.mxu1 %v2203_v10 }
  0x95   : > { %776 = vmatmul.mubr.bf16.vlgmr.msra.gmra.mxu0 %v582_v50  ;;  %817 = vmatmul.mubr.bf16.vlgmr.msra.gmra.mxu1 %v582_v50 }
  0x96   : > { %864 = vmatpush1.bf16.msra.mxu0 %v2205_v11  ;;  %905 = vmatpush1.bf16.msra.mxu1 %v2207_v12 }
  0x97   : > { %865 = vmatprep.subr.bf16.mxu0 %v2210_v13  ;;  %906 = vmatprep.subr.bf16.mxu1 %v2214_v14 }
  0x98   : > { %895 = vmatprep.mubr.bf16.mxu0 %v2540_v3  ;;  %936 = vmatprep.mubr.bf16.mxu1 %v2540_v3 }
  0x9a   : > { %866 = vmatpush1.bf16.msra.mxu0 %v2218_v15  ;;  %907 = vmatpush1.bf16.msra.mxu1 %v2220_v16 }
  0x9b   : > { %867 = vmatprep.subr.bf16.mxu0 %v2224_v17  ;;  %908 = vmatprep.subr.bf16.mxu1 %v2227_v18 }
  0x9e   : > { %868 = vmatpush1.bf16.msra.mxu0 %v2232_v19  ;;  %909 = vmatpush1.bf16.msra.mxu1 %v2236_v20 }
  0x9f   : > { %869 = vmatprep.subr.bf16.mxu0 %v2238_v21  ;;  %910 = vmatprep.subr.bf16.mxu1 %v2241_v22 }
  0xa2   : > { %870 = vmatpush1.bf16.msra.mxu0 %v2243_v23  ;;  %911 = vmatpush1.bf16.msra.mxu1 %v2246_v24 }
  0xa3   : > { %871 = vmatprep.subr.bf16.mxu0 %v2248_v25  ;;  %912 = vmatprep.subr.bf16.mxu1 %v2255_v28 }
  0xa6   : > { %872 = vmatpush1.bf16.msra.mxu0 %v2257_v30  ;;  %913 = vmatpush1.bf16.msra.mxu1 %v2260_v31 }
  0xa7   : > { %873 = vmatprep.subr.bf16.mxu0 %v2266_v32  ;;  %914 = vmatprep.subr.bf16.mxu1 %v2270_v33 }
  0xaa   : > { %874 = vmatpush1.bf16.msra.mxu0 %v2276_v36  ;;  %915 = vmatpush1.bf16.msra.mxu1 %v2280_v37 }
  0xab   : > { %875 = vmatprep.subr.bf16.mxu0 %v2282_v38  ;;  %916 = vmatprep.subr.bf16.mxu1 %v2290_v40 }
  0xae   : > { %876 = vmatpush1.bf16.msra.mxu0 %v2296_v42  ;;  %917 = vmatpush1.bf16.msra.mxu1 %v2300_v43 }
  0xaf   : > { %877 = vmatprep.subr.bf16.mxu0 %v2302_v44  ;;  %918 = vmatprep.subr.bf16.mxu1 %v2306_v46 }
  0xb2   : > { %878 = vmatpush1.bf16.msra.mxu0 %v2309_v47  ;;  %919 = vmatpush1.bf16.msra.mxu1 %v2315_v49 }
  0xb3   : > { %984 = vmatprep.subr.bf16.mxu0 %v2201_v9  ;;  %1025 = vmatprep.subr.bf16.mxu1 %v2203_v10 }
 0x135   : > { %v475_v56 = vpop.f32.mrf.mxu0  ;;  %v528_v59 = vpop.f32.mrf.mxu1 }
 0x137   : > { %v477_v60 = vpop.f32.mrf.mxu0  ;;  %v530_v63 = vpop.f32.mrf.mxu1 }
 0x139   : > { %v479_v0 = vpop.f32.mrf.mxu0  ;;  %v532_v5 = vpop.f32.mrf.mxu1 }
 0x13a   : > { %v2361_v4 = vadd.f32 %v479_v0, %v397_v62  ;;  %v2363_v7 = vadd.f32 %v532_v5, %v405_v61 }
 0x13b   : > { %v481_v6 = vpop.f32.mrf.mxu0  ;;  %v534_v26 = vpop.f32.mrf.mxu1 }
 0x13c   : > { %v2365_v8 = vadd.f32 %v481_v6, %v401_v2  ;;  %v2367_v27 = vadd.f32 %v534_v26, %v409_v1  ;;  %v476_v26 = vadd.f32 %v475_v56, %v397_v62 }
 0x13d   : > { %v538_v29 = vpop.f32.mrf.mxu1  ;;  %v485_v35 = vpop.f32.mrf.mxu0 }
 0x13e   : > { %v2369_v34 = vadd.f32 %v538_v29, %v405_v61  ;;  %v2371_v45 = vadd.f32 %v485_v35, %v397_v62  ;;  %v478_v35 = vadd.f32 %v477_v60, %v401_v2 }
 0x13f   : > { %v540_v41 = vpop.f32.mrf.mxu1  ;;  %v487_v51 = vpop.f32.mrf.mxu0 }
 0x140   : > { %2549 = vst [vmem:[#allocation19_spill] sm:$0xff] %v2369_v34  ;;  %2550 = vst [vmem:[#allocation20_spill] sm:$0xff] %v2371_v45  ;;  %v2373_v50 = vadd.f32 %v540_v41, %v409_v1  ;;  %v2375_v53 = vadd.f32 %v487_v51, %v401_v2 }
 0x141   : > { %v542_v52 = vpop.f32.mrf.mxu1  ;;  %v489_v55 = vpop.f32.mrf.mxu0 }
 0x142   : > { %2551 = vst [vmem:[#allocation21_spill] sm:$0xff] %v2373_v50  ;;  %2552 = vst [vmem:[#allocation22_spill] sm:$0xff] %v2375_v53  ;;  %v2377_v54 = vadd.f32 %v542_v52, %v405_v61  ;;  %v2379_v58 = vadd.f32 %v489_v55, %v397_v62 }
 0x143   : > { %v544_v57 = vpop.f32.mrf.mxu1  ;;  %v491_v5 = vpop.f32.mrf.mxu0 }
 0x144   : > { %2553 = vst [vmem:[#allocation23_spill] sm:$0xff] %v2377_v54  ;;  %2554 = vst [vmem:[#allocation24_spill] sm:$0xff] %v2379_v58  ;;  %v2381_v0 = vadd.f32 %v544_v57, %v409_v1  ;;  %v2383_v6 = vadd.f32 %v491_v5, %v401_v2  ;;  %v529_v5 = vadd.f32 %v528_v59, %v405_v61 }
 0x146   : > { %2555 = vst [vmem:[#allocation25_spill] sm:$0xff] %v2381_v0  ;;  %2556 = vst [vmem:[#allocation26_spill] sm:$0xff] %v2383_v6  ;;  %v531_v0 = vadd.f32 %v530_v63, %v409_v1 }
 0x155   : > { %v777_v29 = vpop.f32.mrf.mxu0  ;;  %v818_v3 = vpop.f32.mrf.mxu1 }
 0x156   : > { %v825_v41 = vadd.f32 %v777_v29, %v476_v26  ;;  %v827_v62 = vadd.f32 %v818_v3, %v529_v5  ;;  %v581_v29 = vld [vmem:[#allocation3] sm:$0xff] }
 0x157   : > { %v779_v34 = vpop.f32.mrf.mxu0  ;;  %v820_v53 = vpop.f32.mrf.mxu1 }
 0x158   : > { %v1519_v50 = vmul.f32 -1.442695, %v825_v41  ;;  %v826_v51 = vadd.f32 %v779_v34, %v478_v35  ;;  %v828_v58 = vadd.f32 %v820_v53, %v531_v0  ;;  %v858_v35 = vpop.permute.xlu0 %857 }
 0x159   : > { %v781_v52 = vpop.f32.mrf.mxu0  ;;  %v822_v45 = vpop.f32.mrf.mxu1  ;;  %vm859_vm3 = vcmp.eq.s32.totalorder %v858_v35, 1 }
 0x15a   : > { %1734 = vpow2.f32 %v1519_v50  ;;  %v1520_v54 = vmul.f32 -1.442695, %v826_v51  ;;  %v1521_v6 = vmul.f32 -1.442695, %v828_v58  ;;  %v2557_v51 = vmov 0  }
 0x15b   : > { %v782_v55 = vpop.f32.mrf.mxu0  ;;  %v823_v57 = vpop.f32.mrf.mxu1  ;;  %v1216_v52 = vstv %s1215_s27 }
 0x15c   : > { %1736 = vpow2.f32 %v1520_v54  ;;  %vm1217_vm5 = vcmp.lt.s32.totalorder %v1216_v52, %v2287_v39 }
 0x15d   : > { %1738 = vpow2.f32 %v1521_v6  ;;  %v1218_v57 = vsel %vm1217_vm5, 1, %v2557_v51 }
 0x167   : > { %v1735_v56 = vpop.eup %1734 }
 0x168   : > { %v832_v60 = vadd.f32 1.0, %v1735_v56 }
 0x169   : > { %v1737_v2 = vpop.eup %1736 }
 0x16a   : > { %1740 = vrcp.f32 %v832_v60  ;;  %v838_v26 = vadd.f32 1.0, %v1737_v2  ;;  %v1739_v34 = vpop.eup %1738 }
 0x16b   : > { %1742 = vtanh.f32 %v827_v62  ;;  %v845_v41 = vadd.f32 1.0, %v1739_v34 }
 0x16c   : > { %1744 = vrcp.f32 %v838_v26 }
 0x16d   : > { %1746 = vrcp.f32 %v845_v41 }
 0x177   : > { %v1741_v50 = vpop.eup %1740 }
 0x178   : > { %v1743_v45 = vpop.eup %1742 }
 0x179   : > { %v1745_v54 = vpop.eup %1744  ;;  %v849_v1 = vmul.f32 %v1743_v45, %v1741_v50 }
 0x17a   : > { %v848_v63 = vmul.f32 %v1745_v54, %v581_v29  ;;  %v1747_v61 = vpop.eup %1746 }
 0x17c   : > { %v850_v59 = vadd.f32 %v849_v1, %v848_v63 }
 0x17e   : > { %1748 = vtanh.f32 %v850_v59  ;;  %v2385_v3 = vsel %vm859_vm3, %v850_v59, %v581_v29 }
 0x18b   : > { %v1749_v53 = vpop.eup %1748 }
 0x18c   : > { %v852_v58 = vmul.f32 %v1749_v53, %v1747_v61 }
 0x18e   : > { %v2388_v0 = vsel %vm859_vm3, %v852_v58, %v2311_v48  ;;  %v1095_v48 = vstv %s1094_s23 }
 0x18f   : > { %v862_v6 = vpack.c.bf16 %v2388_v0, %v2388_v0  ;;  %vm1096_vm4 = vcmp.lt.s32.totalorder %v1095_v48, %v2287_v39  ;;  %v979_v48 = vpop.permute.xlu0 %978 }
 0x190   : > { %v1097_v55 = vsel %vm1096_vm4, 1, %v2557_v51  ;;  %vm980_vm6 = vcmp.eq.s32.totalorder %v979_v48, 1 }
 0x191   : > { %896 = vmatmul.mubr.bf16.vlgmr.msra.gmra.mxu0 %v862_v6  ;;  %937 = vmatmul.mubr.bf16.vlgmr.msra.gmra.mxu1 %v862_v6 }
 0x192   : > { %985 = vmatpush1.bf16.msra.mxu0 %v2205_v11  ;;  %1026 = vmatpush1.bf16.msra.mxu1 %v2207_v12 }
 0x193   : > { %986 = vmatprep.subr.bf16.mxu0 %v2210_v13  ;;  %1027 = vmatprep.subr.bf16.mxu1 %v2214_v14 }
 0x194   : > { %1016 = vmatprep.mubr.bf16.mxu0 %v2557_v51  ;;  %1057 = vmatprep.mubr.bf16.mxu1 %v2557_v51 }
 0x195   : > { %1099 = vperm.xlu1 %1679, %v1097_v55  }
 0x196   : > { %987 = vmatpush1.bf16.msra.mxu0 %v2218_v15  ;;  %1028 = vmatpush1.bf16.msra.mxu1 %v2220_v16 }
 0x197   : > { %988 = vmatprep.subr.bf16.mxu0 %v2224_v17  ;;  %1029 = vmatprep.subr.bf16.mxu1 %v2227_v18 }
 0x199   : > { %1220 = vperm.xlu1 %1679, %v1218_v57  }
 0x19a   : > { %989 = vmatpush1.bf16.msra.mxu0 %v2232_v19  ;;  %1030 = vmatpush1.bf16.msra.mxu1 %v2236_v20 }
 0x19b   : > { %990 = vmatprep.subr.bf16.mxu0 %v2238_v21  ;;  %1031 = vmatprep.subr.bf16.mxu1 %v2241_v22 }
 0x19e   : > { %991 = vmatpush1.bf16.msra.mxu0 %v2243_v23  ;;  %1032 = vmatpush1.bf16.msra.mxu1 %v2246_v24 }
 0x19f   : > { %992 = vmatprep.subr.bf16.mxu0 %v2248_v25  ;;  %1033 = vmatprep.subr.bf16.mxu1 %v2255_v28 }
 0x1a2   : > { %993 = vmatpush1.bf16.msra.mxu0 %v2257_v30  ;;  %1034 = vmatpush1.bf16.msra.mxu1 %v2260_v31 }
 0x1a3   : > { %994 = vmatprep.subr.bf16.mxu0 %v2266_v32  ;;  %1035 = vmatprep.subr.bf16.mxu1 %v2270_v33 }
 0x1a6   : > { %995 = vmatpush1.bf16.msra.mxu0 %v2276_v36  ;;  %1036 = vmatpush1.bf16.msra.mxu1 %v2280_v37 }
 0x1a7   : > { %996 = vmatprep.subr.bf16.mxu0 %v2282_v38  ;;  %1037 = vmatprep.subr.bf16.mxu1 %v2290_v40 }
 0x1aa   : > { %997 = vmatpush1.bf16.msra.mxu0 %v2296_v42  ;;  %1038 = vmatpush1.bf16.msra.mxu1 %v2300_v43 }
 0x1ab   : > { %998 = vmatprep.subr.bf16.mxu0 %v2302_v44  ;;  %1039 = vmatprep.subr.bf16.mxu1 %v2306_v46 }
 0x1ae   : > { %999 = vmatpush1.bf16.msra.mxu0 %v2309_v47  ;;  %1040 = vmatpush1.bf16.msra.mxu1 %v2315_v49 }
 0x1af   : > { %1105 = vmatprep.subr.bf16.mxu0 %v2201_v9  ;;  %1146 = vmatprep.subr.bf16.mxu1 %v2203_v10 }
 0x251   : > { %v897_v5 = vpop.f32.mrf.mxu0  ;;  %v938_v56 = vpop.f32.mrf.mxu1 }
 0x252   : > { %v945_v9 = vadd.f32 %v897_v5, %v2361_v4  ;;  %v947_v35 = vadd.f32 %v938_v56, %v2363_v7 }
 0x253   : > { %v899_v62 = vpop.f32.mrf.mxu0  ;;  %v940_v10 = vpop.f32.mrf.mxu1 }
 0x254   : > { %v1522_v60 = vmul.f32 -1.442695, %v945_v9  ;;  %v946_v2 = vadd.f32 %v899_v62, %v2365_v8  ;;  %v948_v45 = vadd.f32 %v940_v10, %v2367_v27 }
 0x255   : > { %v901_v26 = vpop.f32.mrf.mxu0  ;;  %v942_v34 = vpop.f32.mrf.mxu1 }
 0x256   : > { %1750 = vpow2.f32 %v1522_v60  ;;  %v1523_v50 = vmul.f32 -1.442695, %v946_v2  ;;  %v1524_v54 = vmul.f32 -1.442695, %v948_v45 }
 0x257   : > { %v902_v39 = vpop.f32.mrf.mxu0  ;;  %v943_v29 = vpop.f32.mrf.mxu1 }
 0x258   : > { %1752 = vpow2.f32 %v1523_v50  ;;  %v2562_v39 = vld [vmem:[#allocation24_spill] sm:$0xff] }
 0x259   : > { %1754 = vtanh.f32 %v947_v35 }
 0x25a   : > { %1756 = vpow2.f32 %v1524_v54 }
 0x263   : > { %v1751_v41 = vpop.eup %1750 }
 0x264   : > { %v952_v63 = vadd.f32 1.0, %v1751_v41  ;;  %v2563_v41 = vld [vmem:[#allocation26_spill] sm:$0xff] }
 0x265   : > { %v1753_v4 = vpop.eup %1752 }
 0x266   : > { %1758 = vrcp.f32 %v952_v63  ;;  %v958_v1 = vadd.f32 1.0, %v1753_v4  ;;  %v1755_v8 = vpop.eup %1754 }
 0x267   : > { %v1757_v59 = vpop.eup %1756 }
 0x268   : > { %1760 = vrcp.f32 %v958_v1  ;;  %v965_v6 = vadd.f32 1.0, %v1757_v59 }
 0x26a   : > { %1762 = vrcp.f32 %v965_v6  ;;  %v2565_v6 = vld [vmem:[#allocation23_spill] sm:$0xff] }
 0x273   : > { %v1759_v61 = vpop.eup %1758 }
 0x274   : > { %v969_v53 = vmul.f32 %v1759_v61, %v1755_v8 }
 0x275   : > { %v1761_v58 = vpop.eup %1760 }
 0x276   : > { %v968_v27 = vmul.f32 %v1761_v58, %v2385_v3 }
 0x277   : > { %v1763_v55 = vpop.eup %1762 }
 0x278   : > { %v970_v52 = vadd.f32 %v969_v53, %v968_v27  ;;  %v2564_v53 = vld [vmem:[#allocation25_spill] sm:$0xff] }
 0x27a   : > { %1764 = vtanh.f32 %v970_v52  ;;  %v2438_v7 = vsel %vm980_vm6, %v970_v52, %v2385_v3 }
 0x287   : > { %v1765_v57 = vpop.eup %1764 }
 0x288   : > { %v972_v5 = vmul.f32 %v1765_v57, %v1763_v55 }
 0x28a   : > { %v2441_v56 = vsel %vm980_vm6, %v972_v5, %v2388_v0 }
 0x28b   : > { %v983_v9 = vpack.c.bf16 %v2441_v56, %v2441_v56 }
 0x28d   : > { %1017 = vmatmul.mubr.bf16.vlgmr.msra.gmra.mxu0 %v983_v9  ;;  %1058 = vmatmul.mubr.bf16.vlgmr.msra.gmra.mxu1 %v983_v9 }
 0x28e   : > { %1106 = vmatpush1.bf16.msra.mxu0 %v2205_v11  ;;  %1147 = vmatpush1.bf16.msra.mxu1 %v2207_v12 }
 0x28f   : > { %1107 = vmatprep.subr.bf16.mxu0 %v2210_v13  ;;  %1148 = vmatprep.subr.bf16.mxu1 %v2214_v14  ;;  %v2558_v13 = vld [vmem:[#allocation20_spill] sm:$0xff] }
 0x290   : > { %1137 = vmatprep.mubr.bf16.mxu0 %v2557_v51  ;;  %1178 = vmatprep.mubr.bf16.mxu1 %v2557_v51 }
 0x292   : > { %1108 = vmatpush1.bf16.msra.mxu0 %v2218_v15  ;;  %1149 = vmatpush1.bf16.msra.mxu1 %v2220_v16 }
 0x293   : > { %1109 = vmatprep.subr.bf16.mxu0 %v2224_v17  ;;  %1150 = vmatprep.subr.bf16.mxu1 %v2227_v18  ;;  %v2559_v18 = vld [vmem:[#allocation22_spill] sm:$0xff] }
 0x296   : > { %1110 = vmatpush1.bf16.msra.mxu0 %v2232_v19  ;;  %1151 = vmatpush1.bf16.msra.mxu1 %v2236_v20 }
 0x297   : > { %1111 = vmatprep.subr.bf16.mxu0 %v2238_v21  ;;  %1152 = vmatprep.subr.bf16.mxu1 %v2241_v22 }
 0x29a   : > { %1112 = vmatpush1.bf16.msra.mxu0 %v2243_v23  ;;  %1153 = vmatpush1.bf16.msra.mxu1 %v2246_v24 }
 0x29b   : > { %1113 = vmatprep.subr.bf16.mxu0 %v2248_v25  ;;  %1154 = vmatprep.subr.bf16.mxu1 %v2255_v28  ;;  %v2560_v25 = vld [vmem:[#allocation21_spill] sm:$0xff] }
 0x29e   : > { %1114 = vmatpush1.bf16.msra.mxu0 %v2257_v30  ;;  %1155 = vmatpush1.bf16.msra.mxu1 %v2260_v31  ;;  %v2561_v30 = vld [vmem:[#allocation19_spill] sm:$0xff] }
 0x29f   : > { %1115 = vmatprep.subr.bf16.mxu0 %v2266_v32  ;;  %1156 = vmatprep.subr.bf16.mxu1 %v2270_v33 }
 0x2a2   : > { %1116 = vmatpush1.bf16.msra.mxu0 %v2276_v36  ;;  %1157 = vmatpush1.bf16.msra.mxu1 %v2280_v37 }
 0x2a3   : > { %1117 = vmatprep.subr.bf16.mxu0 %v2282_v38  ;;  %1158 = vmatprep.subr.bf16.mxu1 %v2290_v40 }
 0x2a6   : > { %1118 = vmatpush1.bf16.msra.mxu0 %v2296_v42  ;;  %1159 = vmatpush1.bf16.msra.mxu1 %v2300_v43 }
 0x2a7   : > { %1119 = vmatprep.subr.bf16.mxu0 %v2302_v44  ;;  %1160 = vmatprep.subr.bf16.mxu1 %v2306_v46  ;;  %v1100_v44 = vpop.permute.xlu1 %1099 }
 0x2a8   : > { %vm1101_vm7 = vcmp.eq.s32.totalorder %v1100_v44, 1 }
 0x2aa   : > { %1120 = vmatpush1.bf16.msra.mxu0 %v2309_v47  ;;  %1161 = vmatpush1.bf16.msra.mxu1 %v2315_v49 }
 0x34d   : > { %v1018_v11 = vpop.f32.mrf.mxu0  ;;  %v1059_v12 = vpop.f32.mrf.mxu1 }
 0x34e   : > { %v1066_v14 = vadd.f32 %v1018_v11, %v2558_v13  ;;  %v1068_v31 = vadd.f32 %v1059_v12, %v2561_v30 }
 0x34f   : > { %v1020_v15 = vpop.f32.mrf.mxu0  ;;  %v1061_v16 = vpop.f32.mrf.mxu1 }
 0x350   : > { %v1525_v17 = vmul.f32 -1.442695, %v1066_v14  ;;  %v1067_v19 = vadd.f32 %v1020_v15, %v2559_v18  ;;  %v1069_v28 = vadd.f32 %v1061_v16, %v2560_v25  ;;  %v1221_v14 = vpop.permute.xlu1 %1220 }
 0x351   : > { %v1022_v20 = vpop.f32.mrf.mxu0  ;;  %v1063_v21 = vpop.f32.mrf.mxu1  ;;  %vm1222_vm8 = vcmp.eq.s32.totalorder %v1221_v14, 1 }
 0x352   : > { %1766 = vpow2.f32 %v1525_v17  ;;  %v1526_v22 = vmul.f32 -1.442695, %v1067_v19  ;;  %v1527_v32 = vmul.f32 -1.442695, %v1069_v28 }
 0x353   : > { %v1023_v23 = vpop.f32.mrf.mxu0  ;;  %v1064_v24 = vpop.f32.mrf.mxu1 }
 0x354   : > { %1768 = vpow2.f32 %v1526_v22 }
 0x355   : > { %1770 = vtanh.f32 %v1068_v31 }
 0x356   : > { %1772 = vpow2.f32 %v1527_v32 }
 0x35f   : > { %v1767_v33 = vpop.eup %1766 }
 0x360   : > { %v1073_v36 = vadd.f32 1.0, %v1767_v33 }
 0x361   : > { %v1769_v37 = vpop.eup %1768 }
 0x362   : > { %1774 = vrcp.f32 %v1073_v36  ;;  %v1079_v38 = vadd.f32 1.0, %v1769_v37  ;;  %v1771_v40 = vpop.eup %1770 }
 0x363   : > { %v1773_v42 = vpop.eup %1772 }
 0x364   : > { %1776 = vrcp.f32 %v1079_v38  ;;  %v1086_v49 = vadd.f32 1.0, %v1773_v42 }
 0x366   : > { %1778 = vrcp.f32 %v1086_v49 }
 0x36f   : > { %v1775_v43 = vpop.eup %1774 }
 0x370   : > { %v1090_v46 = vmul.f32 %v1775_v43, %v1771_v40 }
 0x371   : > { %v1777_v47 = vpop.eup %1776 }
 0x372   : > { %v1089_v3 = vmul.f32 %v1777_v47, %v2438_v7 }
 0x373   : > { %v1779_v62 = vpop.eup %1778 }
 0x374   : > { %v1091_v0 = vadd.f32 %v1090_v46, %v1089_v3 }
 0x376   : > { %1780 = vtanh.f32 %v1091_v0  ;;  %v1103_v51 = vsel %vm1101_vm7, %v1091_v0, %v2438_v7 }
 0x383   : > { %v1781_v10 = vpop.eup %1780 }
 0x384   : > { %v1093_v60 = vmul.f32 %v1781_v10, %v1779_v62 }
 0x386   : > { %v1102_v2 = vsel %vm1101_vm7, %v1093_v60, %v2441_v56 }
 0x387   : > { %v1104_v26 = vpack.c.bf16 %v1102_v2, %v1102_v2 }
 0x389   : > { %1138 = vmatmul.mubr.bf16.vlgmr.msra.gmra.mxu0 %v1104_v26  ;;  %1179 = vmatmul.mubr.bf16.vlgmr.msra.gmra.mxu1 %v1104_v26 }
 0x449   : > { %v1139_v34 = vpop.f32.mrf.mxu0  ;;  %v1180_v50 = vpop.f32.mrf.mxu1 }
 0x44a   : > { %v1187_v29 = vadd.f32 %v1139_v34, %v2562_v39  ;;  %v1189_v48 = vadd.f32 %v1180_v50, %v2565_v6 }
 0x44b   : > { %v1141_v45 = vpop.f32.mrf.mxu0  ;;  %v1182_v35 = vpop.f32.mrf.mxu1 }
 0x44c   : > { %v1528_v54 = vmul.f32 -1.442695, %v1187_v29  ;;  %v1188_v63 = vadd.f32 %v1141_v45, %v2563_v41  ;;  %v1190_v58 = vadd.f32 %v1182_v35, %v2564_v53 }
 0x44d   : > { %v1143_v4 = vpop.f32.mrf.mxu0  ;;  %v1184_v1 = vpop.f32.mrf.mxu1 }
 0x44e   : > { %1782 = vpow2.f32 %v1528_v54  ;;  %v1529_v8 = vmul.f32 -1.442695, %v1188_v63  ;;  %v1530_v27 = vmul.f32 -1.442695, %v1190_v58 }
 0x44f   : > { %v1144_v59 = vpop.f32.mrf.mxu0  ;;  %v1185_v61 = vpop.f32.mrf.mxu1 }
 0x450   : > { %1784 = vpow2.f32 %v1529_v8 }
 0x451   : > { %1786 = vtanh.f32 %v1189_v48 }
 0x452   : > { %1788 = vpow2.f32 %v1530_v27 }
 0x45b   : > { %v1783_v52 = vpop.eup %1782 }
 0x45c   : > { %v1194_v7 = vadd.f32 1.0, %v1783_v52 }
 0x45d   : > { %v1785_v55 = vpop.eup %1784 }
 0x45e   : > { %1790 = vrcp.f32 %v1194_v7  ;;  %v1200_v57 = vadd.f32 1.0, %v1785_v55  ;;  %v1787_v5 = vpop.eup %1786 }
 0x45f   : > { %v1789_v56 = vpop.eup %1788 }
 0x460   : > { %1792 = vrcp.f32 %v1200_v57  ;;  %v1207_v13 = vadd.f32 1.0, %v1789_v56 }
 0x462   : > { %1794 = vrcp.f32 %v1207_v13 }
 0x46b   : > { %v1791_v9 = vpop.eup %1790 }
 0x46c   : > { %v1211_v11 = vmul.f32 %v1791_v9, %v1787_v5 }
 0x46d   : > { %v1793_v12 = vpop.eup %1792 }
 0x46e   : > { %v1210_v15 = vmul.f32 %v1793_v12, %v1103_v51 }
 0x46f   : > { %v1795_v18 = vpop.eup %1794 }
 0x470   : > { %v1212_v16 = vadd.f32 %v1211_v11, %v1210_v15 }
 0x472   : > { %1796 = vtanh.f32 %v1212_v16  ;;  %v1224_v17 = vsel %vm1222_vm8, %v1212_v16, %v1103_v51 }
 0x473   : > { %1226 = vst [vmem:[#allocation3] sm:$0xff] %v1224_v17 }
 0x47f   : > { %v1797_v19 = vpop.eup %1796 }
 0x480   : > { %v1214_v20 = vmul.f32 %v1797_v19, %v1795_v18 }
 0x482   : > { %v1223_v21 = vsel %vm1222_vm8, %v1214_v20, %v1102_v2 }
 0x483   : > { %1225 = vst [vmem:[#allocation2] sm:$0xff] %v1223_v21 }
 0x484 PF: > { %p1531_p11 = scmp.ne.s32.totalorder %s1990_s10, 1 }
 0x486   : > { %1230 = sbr.rel (%p1531_p11) target bundleno = 1395 (0x573), region = 76 }
 0x48b   : > { %v1798_v22 = vld [vmem:[#allocation12 + $0x38] sm:$0xff]   ;;  %v2012_v23 = vmov 0.0   ;;  %v1799_v24 = vld [vmem:[#allocation12 + $0x30] sm:$0xff]   ;;  %vm2013_vm9 = vmmov 0   ;;  %v1800_v25 = vld [vmem:[#allocation12 + $0x28] sm:$0xff]  }
 0x48c   : > { %1555 = vmatprep.subr.bf16.mxu0 %v2012_v23  ;;  %1571 = vmatprep.mubr.msk.bf16.mxu0 %vm2013_vm9, %v2012_v23  ;;  %v1801_v28 = vld [vmem:[#allocation12 + $0x20] sm:$0xff]   ;;  %v1802_v30 = vld [vmem:[#allocation12 + $0x18] sm:$0xff]   ;;  %v1803_v31 = vld [vmem:[#allocation12 + $0x10] sm:$0xff]  }
 0x48d   : > { %1556 = vmatpush3.bf16.msra.mxu0 %v1798_v22  ;;  %v1804_v32 = vld [vmem:[#allocation12 + $0x8] sm:$0xff]   ;;  %v1805_v33 = vld [vmem:[#allocation12] sm:$0xff]   ;;  %v1231_v36 = vld [vmem:[#allocation2] sm:$0xff] }
 0x48e   : > { %1557 = vmatprep.subr.bf16.mxu0 %v2012_v23  ;;  %v1232_v37 = vpack.c.bf16 %v1231_v36, %v1231_v36  ;;  %v1532_v38 = vld [vmem:[%s2534_s7] ss:$0 sm:$0xff] }
 0x491   : > { %1558 = vmatpush3.bf16.msra.mxu0 %v1799_v24 }
 0x492   : > { %1559 = vmatprep.subr.bf16.mxu0 %v2012_v23 }
 0x495   : > { %1560 = vmatpush3.bf16.msra.mxu0 %v1800_v25 }
 0x496   : > { %1561 = vmatprep.subr.bf16.mxu0 %v2012_v23 }
 0x499   : > { %1562 = vmatpush3.bf16.msra.mxu0 %v1801_v28 }
 0x49a   : > { %1563 = vmatprep.subr.bf16.mxu0 %v2012_v23 }
 0x49d   : > { %1564 = vmatpush3.bf16.msra.mxu0 %v1802_v30 }
 0x49e   : > { %1565 = vmatprep.subr.bf16.mxu0 %v2012_v23 }
 0x4a1   : > { %1566 = vmatpush3.bf16.msra.mxu0 %v1803_v31 }
 0x4a2   : > { %1567 = vmatprep.subr.bf16.mxu0 %v2012_v23 }
 0x4a5   : > { %1568 = vmatpush3.bf16.msra.mxu0 %v1804_v32 }
 0x4a6   : > { %1569 = vmatprep.subr.bf16.mxu0 %v2012_v23 }
 0x4a9   : > { %1570 = vmatpush3.bf16.msra.mxu0 %v1805_v33 }
 0x4ac   : > { %1572 = vmatmul.mubr.bf16.vlgmr.msra.gmra.mxu0 %v1232_v37 }
 0x56c   : > { %v1338_v40 = vpop.f32.mrf.mxu0 }
 0x56d   : > { %v1339_v42 = vadd.f32 %v1532_v38, %v1338_v40 }
 0x56e   : > { %v1573_v43 = vpop.f32.mrf.mxu0 }
 0x56f   : > { %1344 = vst [vmem:[#allocation14] sm:$0xff] %v1339_v42 }
 0x570   : > { %v1341_v44 = vpop.f32.mrf.mxu0 }
 0x572   : > { %v1574_v46 = vpop.f32.mrf.mxu0 }
 0x573 PF: > { %s2566_s29 = sadd.s32 4294967295, %s1998_s12   ;;  %s2014_s17 = smov [#allocation14]  }
 0x574   : > { %p2494_p7 = scmp.eq.s32.totalorder %s2566_s29, 1  ;;  %s1354_s26 = sshll.u32 %s2014_s17, 4  ;;  %s1355_s26 = int_to_ptr.vmem [resolvable:$true] %s1354_s26 }
 0x575   : > { %s1912_s19 = scalar_lea.vmem %s1355_s26, 128  ;;  %p1919_p3 = scmp.lt.s32.totalorder %s1355_s26, %s1355_s26 }
 0x576   : > { %p1913_p13 = scmp.ne.s32.totalorder %s1355_s26, %s1912_s19  ;;  %p1920_p6 = scmp.lt.s32.totalorder %s1912_s19, %s1912_s19 }
 0x578   : > { %p1914_p0 = pnand %p1913_p13, %p2494_p7  ;;  %p1921_p1 = por %p1920_p6, %p1919_p3 }
 0x57a   : > { %p1915_p2 = pneg %p1914_p0 }
 0x57c   : > { %p1922_p4 = pnand %p1921_p1, %p1915_p2 }
 0x57e   : > { %1925 = shalt.err (!%p1922_p4)
}
 0x57f   : > { %1590 = dma.vmem_to_hbm [thread:$0]  (%p2494_p7), %s1355_s26, 128, %s2535_s8, [#allocation8]  }
 0x580   : > { %1973 = dma.done.wait (%p2494_p7), [#allocation8], 128  }
 0x581   : > { %1975 = vsyncadd (%p2494_p7), [#allocation8], 4294967168 }
 0x582 PF: > { %s25_s12 = sadd.s32 1, %s1998_s12   ;;  %s2568_s29 = smov %s1982_s30 }
 0x583   : > { %p22_p8 = scmp.ge.s32.totalorder %s25_s12, 4   ;;  %s2569_s30 = smov %s1986_s9 }
 0x584   : > { %s2570_s9 = smov %s2158_s22  ;;  %s2571_s10 = smov %s1994_s11 }
 0x585   : > { %s2572_s11 = smov %s2574_s25  ;;  %24 = sbr.rel (!%p22_p8) target bundleno = 9 (0x9), region = 113 }
 0x58a   :  { %1367 = vsyncpa [#allocation7], 1 }
 0x58b   :  { %1369 = vsyncpa [#allocation7 + $0x1], 1 }
 0x58c   :  { %1370 = vsyncpa [#allocation10], 1 }
 0x58d   :  { %1371 = vsyncpa [#allocation13], 1 }
 0x58e   :  { %1372 = vsyncpa [#allocation8], 1 }
 0x58f   :  { %1374 = vsyncpa [#allocation8 + $0x1], 1 }

</bundles_post_ra>
